<compile_context>
chip_gen: v6e
topology: v6e:2x2x1
jax: 0.10.0
libtpu: 0.0.40
codegen_flags: <defaults>
</compile_context>

<pallas_src>
import functools

import jax
import jax.numpy as jnp
from jax.experimental import pallas as pl
from jax.experimental.pallas import tpu as pltpu


def _spectrum_loss_kernel(logits_ref, targets_ref, out_ref, *, n_rows):
    # logits_ref: (TILE_N, C) native dtype; cast to f32 once it is in VMEM.
    logits = logits_ref[...].astype(jnp.float32)
    tgt = targets_ref[...]                                   # (TILE_N, 1) int32
    tile_n, num_classes = logits.shape

    # Mask for the (possibly partial) last tile: rows past the real batch end
    # hold unspecified data and must not contribute to either sum.
    row_in_tile = jax.lax.broadcasted_iota(jnp.int32, (tile_n, 1), 0)
    global_row = pl.program_id(0) * tile_n + row_in_tile
    valid = global_row < n_rows                              # (TILE_N, 1) bool

    class_ids = jax.lax.broadcasted_iota(jnp.int32, (tile_n, num_classes), 1)
    onehot = class_ids == tgt                                # (TILE_N, C) bool

    # --- cross entropy: sum over valid rows of (logsumexp - target_logit) ---
    m = jnp.max(logits, axis=-1, keepdims=True)              # (TILE_N, 1)
    sumexp = jnp.sum(jnp.exp(logits - m), axis=-1, keepdims=True)
    lse = m + jnp.log(sumexp)                                # (TILE_N, 1)

    # target logit as one full-tile masked sum (instead of per-row reduce + sum)
    tgt_logit_sum = jnp.sum(jnp.where(onehot & valid, logits, 0.0))
    ce_sum = jnp.sum(jnp.where(valid, lse, 0.0)) - tgt_logit_sum

    # --- spectrum score partial: sum over valid rows of |argmax - target| ---
    is_max = logits == m
    # first index achieving the max (matches jnp/torch argmax tie-breaking)
    pred = jnp.min(jnp.where(is_max, class_ids, num_classes),
                   axis=-1, keepdims=True)                   # (TILE_N, 1) int32
    dist = jnp.abs(pred - tgt).astype(jnp.float32)
    dist_sum = jnp.sum(jnp.where(valid, dist, 0.0))

    # Lane-dense partial-sum block: sublane 0 = ce_sum, sublane 1 = dist_sum.
    row = jax.lax.broadcasted_iota(jnp.int32, (1, 8, 128), 1)
    out_ref[...] = jnp.where(row == 0, ce_sum,
                             jnp.where(row == 1, dist_sum, 0.0))


def _pick_tile_n(n, c, itemsize):
    """Largest batch tile that keeps double-buffered inputs well under VMEM
    limits on every chip generation (v7x has only 64 MiB physical VMEM)."""
    budget_bytes = 6 * 1024 * 1024            # per input-buffer set (x2 pipelining)
    bytes_per_row = c * itemsize + 128 * 4    # logits row + lane-padded i32 target
    cap = max(8, budget_bytes // bytes_per_row)
    cap = min(cap, 1024)                      # >=512 rows already ~85% of HBM roofline
    if n <= cap:
        return n                              # single full-batch tile
    return int(max(8, (cap // 8) * 8))        # multiple of 8 for the sublane dim


def spectrum_loss(logits, targets, *, tile_n=None):
    """logits: (N, C) float (any float dtype, not upcast in HBM);
    targets: (N,) int.  Returns scalar f32 loss."""
    n, c = logits.shape
    if tile_n is None:
        tile_n = _pick_tile_n(n, c, jnp.dtype(logits.dtype).itemsize)
    tile_n = min(int(tile_n), n)
    if tile_n != n and tile_n % 8 != 0:
        tile_n = max(8, (tile_n // 8) * 8)
    num_tiles = (n + tile_n - 1) // tile_n

    # TODO(synk): (N,1) int32 targets pad to 128 lanes in VMEM; negligible next
    # to the logits tile, but could be moved to SMEM scalar-prefetch for tiny C.
    targets2d = targets.astype(jnp.int32).reshape(n, 1)

    kernel = functools.partial(_spectrum_loss_kernel, n_rows=n)

    partials = pl.pallas_call(
        kernel,
        out_shape=jax.ShapeDtypeStruct((num_tiles, 8, 128), jnp.float32),
        grid_spec=pltpu.PrefetchScalarGridSpec(
            num_scalar_prefetch=0,
            grid=(num_tiles,),
            in_specs=[
                pl.BlockSpec((tile_n, c), lambda i: (i, 0)),
                pl.BlockSpec((tile_n, 1), lambda i: (i, 0)),
            ],
            out_specs=pl.BlockSpec((1, 8, 128), lambda i: (i, 0, 0)),
        ),
        compiler_params=pltpu.CompilerParams(
            dimension_semantics=("parallel",),
            vmem_limit_bytes=32 * 1024 * 1024,
        ),
    )(logits, targets2d)

    # Tiny final reduction over per-tile partials (kept in the JAX wrapper so
    # the grid axis stays "parallel" and both v7x TensorCores can be used).
    ce_total = jnp.sum(partials[:, 0, 0])
    dist_total = jnp.sum(partials[:, 1, 0])
    inv_n = 1.0 / float(n)
    return 0.5 * ce_total * inv_n + 0.5 * dist_total * inv_n


def _reference(logits, targets):
    """Pure-JAX reference mirroring the PyTorch module (confusion-matrix path)."""
    n, c = logits.shape
    logits = logits.astype(jnp.float32)
    lse = jax.nn.logsumexp(logits, axis=-1)
    tgt_logit = jnp.take_along_axis(
        logits, targets[:, None].astype(jnp.int32), axis=-1)[:, 0]
    ce = jnp.mean(lse - tgt_logit)
    pred = jnp.argmax(logits, axis=-1)
    confm = jnp.zeros((c, c), jnp.float32).at[targets.astype(jnp.int32), pred].add(1.0)
    i = jnp.arange(c)[:, None]
    j = jnp.arange(c)[None, :]
    diag = jnp.abs(i - j).astype(jnp.float32)
    ss = jnp.sum((confm / jnp.sum(confm)) * diag)
    return 0.5 * ce + 0.5 * ss


if __name__ == "__main__":
    key = jax.random.PRNGKey(0)
    k1, k2, k3, k4 = jax.random.split(key, 4)

    # Case 1: f32 logits, batch fits a single tile.
    n1, c1 = 8, 16
    logits1 = jax.random.normal(k1, (n1, c1), dtype=jnp.float32)
    targets1 = jax.random.randint(k2, (n1,), 0, c1, dtype=jnp.int32)
    out1 = jax.block_until_ready(spectrum_loss(logits1, targets1))
    ref1 = jax.block_until_ready(_reference(logits1, targets1))
    assert jnp.allclose(out1, ref1, atol=1e-5, rtol=1e-5), (out1, ref1)

    # Case 2: bf16 logits (native-dtype HBM path), ragged batch with a forced
    # small tile to exercise multi-tile parallel partials + last-tile masking.
    n2, c2 = 20, 16
    logits2 = jax.random.normal(k3, (n2, c2), dtype=jnp.float32).astype(jnp.bfloat16)
    targets2 = jax.random.randint(k4, (n2,), 0, c2, dtype=jnp.int32)
    out2 = jax.block_until_ready(spectrum_loss(logits2, targets2, tile_n=8))
    ref2 = jax.block_until_ready(_reference(logits2.astype(jnp.float32), targets2))
    assert jnp.allclose(out2, ref2, atol=1e-3, rtol=1e-3), (out2, ref2)

    print("KERNEL_OK")
</pallas_src>

<mosaic_0001>
module attributes {stable_mosaic.version = 11 : i64} {
  func.func @_spectrum_loss_kernel(%arg0: i32, %arg1: memref<8x16xf32, #tpu.memory_space<vmem>>, %arg2: memref<8x1xi32, #tpu.memory_space<vmem>>, %arg3: memref<1x8x128xf32, #tpu.memory_space<vmem>>) attributes {dimension_semantics = [#tpu.dimension_semantics<parallel>], iteration_bounds = array<i64: 1>, scalar_prefetch = 0 : i64, scratch_operands = 0 : i64, tpu.core_type = #tpu.core_type<tc>, window_params = [{transform_indices = @transform_0, window_bounds = array<i64: 8, 16>}, {transform_indices = @transform_1, window_bounds = array<i64: 8, 1>}, {transform_indices = @transform_2, window_bounds = array<i64: 1, 8, 128>}]} {
    %c0 = arith.constant 0 : index
    %c0_0 = arith.constant 0 : index
    %0 = vector.load %arg1[%c0, %c0_0] : memref<8x16xf32, #tpu.memory_space<vmem>>, vector<8x16xf32>
    %c0_1 = arith.constant 0 : index
    %c0_2 = arith.constant 0 : index
    %1 = vector.load %arg2[%c0_1, %c0_2] : memref<8x1xi32, #tpu.memory_space<vmem>>, vector<8x1xi32>
    %2 = tpu.iota {dimensions = array<i32: 0>} : vector<8x1xi32>
    %c8_i32 = arith.constant 8 : i32
    %3 = arith.muli %arg0, %c8_i32 : i32
    %4 = vector.broadcast %3 : i32 to vector<8x1xi32>
    %5 = arith.addi %4, %2 : vector<8x1xi32>
    %c8_i32_3 = arith.constant 8 : i32
    %6 = vector.broadcast %c8_i32_3 : i32 to vector<8x1xi32>
    %7 = arith.cmpi slt, %5, %6 : vector<8x1xi32>
    %8 = tpu.iota {dimensions = array<i32: 1>} : vector<8x16xi32>
    %9 = vector.broadcast %1 : vector<8x1xi32> to vector<8x16xi32>
    %10 = arith.cmpi eq, %8, %9 : vector<8x16xi32>
    %cst = arith.constant dense<0xFF800000> : vector<8xf32>
    %11 = vector.multi_reduction <maximumf>, %0, %cst [1] : vector<8x16xf32> to vector<8xf32>
    %12 = vector.shape_cast %11 : vector<8xf32> to vector<8x1xf32>
    %13 = vector.broadcast %12 : vector<8x1xf32> to vector<8x16xf32>
    %14 = arith.subf %0, %13 : vector<8x16xf32>
    %15 = math.exp %14 : vector<8x16xf32>
    %cst_4 = arith.constant dense<0.000000e+00> : vector<8xf32>
    %16 = vector.multi_reduction <add>, %15, %cst_4 [1] : vector<8x16xf32> to vector<8xf32>
    %17 = vector.shape_cast %16 : vector<8xf32> to vector<8x1xf32>
    %18 = math.log %17 : vector<8x1xf32>
    %19 = arith.addf %12, %18 : vector<8x1xf32>
    %20 = vector.broadcast %7 : vector<8x1xi1> to vector<8x16xi1>
    %21 = arith.andi %10, %20 : vector<8x16xi1>
    %cst_5 = arith.constant 0.000000e+00 : f32
    %22 = vector.broadcast %cst_5 : f32 to vector<8x16xf32>
    %23 = arith.select %21, %0, %22 : vector<8x16xi1>, vector<8x16xf32>
    %24 = vector.shape_cast %23 : vector<8x16xf32> to vector<1x8x16xf32>
    %cst_6 = arith.constant dense<0.000000e+00> : vector<1xf32>
    %25 = vector.multi_reduction <add>, %24, %cst_6 [1, 2] : vector<1x8x16xf32> to vector<1xf32>
    %26 = vector.shape_cast %25 : vector<1xf32> to vector<1x1x1xf32>
    %27 = vector.extract %26[0, 0, 0] : f32 from vector<1x1x1xf32>
    %cst_7 = arith.constant 0.000000e+00 : f32
    %28 = vector.broadcast %cst_7 : f32 to vector<8x1xf32>
    %29 = arith.select %7, %19, %28 : vector<8x1xi1>, vector<8x1xf32>
    %30 = vector.shape_cast %29 : vector<8x1xf32> to vector<1x8x1xf32>
    %cst_8 = arith.constant dense<0.000000e+00> : vector<1xf32>
    %31 = vector.multi_reduction <add>, %30, %cst_8 [1, 2] : vector<1x8x1xf32> to vector<1xf32>
    %32 = vector.shape_cast %31 : vector<1xf32> to vector<1x1x1xf32>
    %33 = vector.extract %32[0, 0, 0] : f32 from vector<1x1x1xf32>
    %34 = arith.subf %33, %27 : f32
    %35 = vector.broadcast %12 : vector<8x1xf32> to vector<8x16xf32>
    %36 = arith.cmpf oeq, %0, %35 : vector<8x16xf32>
    %c16_i32 = arith.constant 16 : i32
    %37 = vector.broadcast %c16_i32 : i32 to vector<8x16xi32>
    %38 = arith.select %36, %8, %37 : vector<8x16xi1>, vector<8x16xi32>
    %cst_9 = arith.constant dense<2147483647> : vector<8xi32>
    %39 = vector.multi_reduction <minsi>, %38, %cst_9 [1] : vector<8x16xi32> to vector<8xi32>
    %40 = vector.shape_cast %39 : vector<8xi32> to vector<8x1xi32>
    %41 = arith.subi %40, %1 : vector<8x1xi32>
    %42 = math.absi %41 : vector<8x1xi32>
    %43 = arith.sitofp %42 : vector<8x1xi32> to vector<8x1xf32>
    %cst_10 = arith.constant 0.000000e+00 : f32
    %44 = vector.broadcast %cst_10 : f32 to vector<8x1xf32>
    %45 = arith.select %7, %43, %44 : vector<8x1xi1>, vector<8x1xf32>
    %46 = vector.shape_cast %45 : vector<8x1xf32> to vector<1x8x1xf32>
    %cst_11 = arith.constant dense<0.000000e+00> : vector<1xf32>
    %47 = vector.multi_reduction <add>, %46, %cst_11 [1, 2] : vector<1x8x1xf32> to vector<1xf32>
    %48 = vector.shape_cast %47 : vector<1xf32> to vector<1x1x1xf32>
    %49 = vector.extract %48[0, 0, 0] : f32 from vector<1x1x1xf32>
    %50 = tpu.iota {dimensions = array<i32: 1>} : vector<1x8x128xi32>
    %c0_i32 = arith.constant 0 : i32
    %51 = vector.broadcast %c0_i32 : i32 to vector<1x8x128xi32>
    %52 = arith.cmpi eq, %50, %51 : vector<1x8x128xi32>
    %c1_i32 = arith.constant 1 : i32
    %53 = vector.broadcast %c1_i32 : i32 to vector<1x8x128xi32>
    %54 = arith.cmpi eq, %50, %53 : vector<1x8x128xi32>
    %cst_12 = arith.constant 0.000000e+00 : f32
    %55 = vector.broadcast %49 : f32 to vector<1x8x128xf32>
    %56 = vector.broadcast %cst_12 : f32 to vector<1x8x128xf32>
    %57 = arith.select %54, %55, %56 : vector<1x8x128xi1>, vector<1x8x128xf32>
    %58 = vector.broadcast %34 : f32 to vector<1x8x128xf32>
    %59 = arith.select %52, %58, %57 : vector<1x8x128xi1>, vector<1x8x128xf32>
    %c0_13 = arith.constant 0 : index
    %c0_14 = arith.constant 0 : index
    %c0_15 = arith.constant 0 : index
    %60 = vector.load %arg3[%c0_13, %c0_14, %c0_15] : memref<1x8x128xf32, #tpu.memory_space<vmem>>, vector<1x8x128xf32>
    tpu.vector_store %arg3[%c0_13, %c0_14, %c0_15], %59 {strides = array<i32>} : memref<1x8x128xf32, #tpu.memory_space<vmem>>, vector<1x8x128xf32>,
    return
  }
  func.func @transform_0(%arg0: i32) -> (i32, i32) {
    %c0_i32 = arith.constant 0 : i32
    %c0_i32_0 = arith.constant 0 : i32
    return %arg0, %c0_i32 : i32, i32
  }
  func.func @transform_1(%arg0: i32) -> (i32, i32) {
    %c0_i32 = arith.constant 0 : i32
    %c0_i32_0 = arith.constant 0 : i32
    return %arg0, %c0_i32 : i32, i32
  }
  func.func @transform_2(%arg0: i32) -> (i32, i32, i32) {
    %c0_i32 = arith.constant 0 : i32
    %c0_i32_0 = arith.constant 0 : i32
    %c0_i32_1 = arith.constant 0 : i32
    return %arg0, %c0_i32, %c0_i32_0 : i32, i32, i32
  }
}

</mosaic_0001>

<bundles_post_ra>
// kernel: tpu_custom_call.1
= control target key start
LH: loop header
LB: loop body
LE: loop exit
PB: predicated region body
PF: predicated region fallthrough
CT: control target
= control target key end

     0   :  { %vm26_vm0 = vcmask 130048   ;;  %s190_s0 = inlined_call_operand.vmem [shape: f32[8,16], index: 0, kind: input, shape index: {}]   ;;  %s191_s1 = inlined_call_operand.vmem [shape: s32[8,1], index: 1, kind: input, shape index: {}]   ;;  %s192_s2 = inlined_call_operand.hbm [shape: f32[1,8,128], index: 2, kind: output, shape index: {}]  }
   0x1   :  { %v12_v0 = vld [vmem:[%s190_s0] sm:$0xff] }
   0x2   :  { %7 = vsyncpa [#allocation3], 0  ;;  %v27_v1 = vsel %vm26_vm0, %v12_v0, -inf  ;;  %v156_v2 = vmov 0   ;;  %v14_v3 = vlaneseq  ;;  %v13_v14 = vld [vmem:[%s191_s1] sm:$0xff]  ;;  %vm54_vm4 = vcmask 7168  }
   0x3   :  { %28 = vmax.xlane.f32.xlu0 %v27_v1  ;;  %s157_s14 = smov [#allocation2]  }
   0x4   :  { %129 = vset.pattern.permute.xlu0 %v156_v2  ;;  %v21_v4 = vand.u32 127, %v14_v3  ;;  %v15_v58 = vshrl.u32 %v14_v3, 7  ;;  %s112_s15 = sshll.u32 %s157_s14, 4  ;;  %s113_s15 = int_to_ptr.vmem [resolvable:$true] %s112_s15 }
   0x5   :  { %s134_s17 = scalar_lea.vmem %s113_s15, 128  ;;  %p139_p1 = scmp.lt.s32.totalorder %s113_s15, %s113_s15 }
   0x6   :  { %vm100_vm5 = vcmp.eq.s32.totalorder %v15_v58, 1  ;;  %vm99_vm6 = vcmp.eq.s32.totalorder %v15_v58, 0  ;;  %p135_p0 = scmp.ne.s32.totalorder %s113_s15, %s134_s17  ;;  %p140_p2 = scmp.lt.s32.totalorder %s134_s17, %s134_s17 }
   0x8   :  { %p141_p3 = por %p140_p2, %p139_p1 }
   0xa   :  { %p142_p4 = pnand %p141_p3, %p135_p0 }
  0x8c   :  { %v29_v5 = vpop.xlane.xlu0 %28 }
  0x8d   :  { %v30_v6 = vsub.f32 %v12_v0, %v29_v5  ;;  %vm66_vm1 = vcmp.eq.f32.partialorder %v12_v0, %v29_v5 }
  0x8e   :  { %v67_v7 = vsel %vm66_vm1, %v21_v4, 16 }
  0x8f   :  { %v31_v8 = vmul.f32 1.442695, %v30_v6  ;;  %v68_v9 = vsel %vm26_vm0, %v67_v7, 2147483647 }
  0x90   :  { %v70_v10 = vshra.s32 %v68_v9, 16  ;;  %v69_v15 = vand.u32 65535, %v68_v9 }
  0x91   :  { %130 = vpow2.f32 %v31_v8 }
  0x92   :  { %v72_v11 = vcvt.s32.f32 %v70_v10  ;;  %v71_v17 = vcvt.s32.f32 %v69_v15 }
  0x94   :  { %73 = vmin.xlane.f32.xlu0 %v72_v11 }
  0x9e   :  { %v131_v12 = vpop.eup %130 }
  0x9f   :  { %v33_v13 = vsel %vm26_vm0, %v131_v12, 0.0 }
  0xa0   :  { %34 = vadd.xlane.f32.xlu1 %v33_v13 }
  0xaa   :  { %23 = vperm.xlu0 %129, %v13_v14  }
 0x11d   :  { %v74_v16 = vpop.xlane.xlu0 %73 }
 0x11e   :  { %vm75_vm2 = vcmp.eq.f32.partialorder %v72_v11, %v74_v16  ;;  %v80_v27 = vcvt.f32.s32 %v74_v16 }
 0x11f   :  { %v76_v18 = vsel %vm75_vm2, %v71_v17, inf }
 0x120   :  { %77 = vmin.xlane.f32.xlu1 %v76_v18  ;;  %v81_v29 = vshll.u32 %v80_v27, 16 }
 0x125   :  { %v24_v19 = vpop.permute.xlu0 %23 }
 0x126   :  { %vm25_vm3 = vcmp.eq.s32.totalorder %v21_v4, %v24_v19 }
 0x127   :  { %v42_v20 = vsel %vm25_vm3, %v12_v0, 0.0 }
 0x128   :  { %v43_v21 = vsel %vm26_vm0, %v42_v20, 0.0 }
 0x129   :  { %v35_v22 = vpop.xlane.xlu1 %34  ;;  %44 = vadd.xlane.f32.xlu1 %v43_v21 }
 0x12a   :  { %132 = vlog2.f32 %v35_v22 }
 0x137   :  { %v133_v23 = vpop.eup %132 }
 0x138   :  { %v37_v24 = vmul.f32 0.6931472, %v133_v23 }
 0x13a   :  { %v38_v25 = vadd.f32 %v37_v24, %v29_v5 }
 0x13c   :  { %v55_v26 = vsel %vm54_vm4, %v38_v25, 0.0 }
 0x13d   :  { %56 = vadd.xlane.f32.xlu1 %v55_v26 }
 0x1a9   :  { %v78_v28 = vpop.xlane.xlu1 %77 }
 0x1aa   :  { %v79_v30 = vcvt.f32.s32 %v78_v28 }
 0x1ac   :  { %v82_v31 = vadd.s32 %v81_v29, %v79_v30 }
 0x1ae   :  { %v83_v32 = vsub.s32 %v82_v31, %v13_v14 }
 0x1b0   :  { %v85_v33 = vsub.s32 0, %v83_v32 }
 0x1b2   :  { %v120_v34 = vmin.u32 %v85_v33, %v83_v32  ;;  %v45_v35 = vpop.xlane.xlu1 %44 }
 0x1b3   :  { %v46_v36 = vrot.slane %v45_v35, 4 }
 0x1b4   :  { %v87_v37 = vcvt.s32.f32 %v120_v34 }
 0x1b5   :  { %v47_v38 = vadd.f32 %v46_v36, %v45_v35 }
 0x1b6   :  { %v89_v39 = vsel %vm54_vm4, %v87_v37, 0.0 }
 0x1b7   :  { %90 = vadd.xlane.f32.xlu1 %v89_v39  ;;  %v48_v40 = vrot.slane %v47_v38, 2 }
 0x1b9   :  { %v49_v41 = vadd.f32 %v48_v40, %v47_v38 }
 0x1bb   :  { %v50_v42 = vrot.slane %v49_v41, 1 }
 0x1bd   :  { %v51_v43 = vadd.f32 %v50_v42, %v49_v41 }
 0x1bf   :  { %121 = vpush %v51_v43 }
 0x1c6   :  { %v57_v44 = vpop.xlane.xlu1 %56 }
 0x1c7   :  { %v58_v45 = vrot.slane %v57_v44, 4 }
 0x1c9   :  { %v59_v46 = vadd.f32 %v58_v45, %v57_v44 }
 0x1cb   :  { %v60_v47 = vrot.slane %v59_v46, 2 }
 0x1cd   :  { %v61_v48 = vadd.f32 %v60_v47, %v59_v46 }
 0x1cf   :  { %v62_v49 = vrot.slane %v61_v48, 1 }
 0x1d1   :  { %v63_v50 = vadd.f32 %v62_v49, %v61_v48 }
 0x1d3   :  { %123 = vpush %v63_v50 }
 0x1f0   :  { %s122_s1 = spop %121 }
 0x204   :  { %s124_s12 = spop %123 }
 0x205   :  { %s65_s13 = ssub.f32 %s124_s12, %s122_s1 }
 0x207   :  { %v103_v60 = vstv %s65_s13 }
 0x240   :  { %v91_v51 = vpop.xlane.xlu1 %90 }
 0x241   :  { %v92_v52 = vrot.slane %v91_v51, 4 }
 0x243   :  { %v93_v53 = vadd.f32 %v92_v52, %v91_v51 }
 0x245   :  { %v94_v54 = vrot.slane %v93_v53, 2 }
 0x247   :  { %v95_v55 = vadd.f32 %v94_v54, %v93_v53 }
 0x249   :  { %v96_v56 = vrot.slane %v95_v55, 1 }
 0x24b   :  { %v97_v57 = vadd.f32 %v96_v56, %v95_v55 }
 0x24d   :  { %125 = vpush %v97_v57 }
 0x27e   :  { %s126_s16 = spop %125 }
 0x27f   :  { %v101_v59 = vstv %s126_s16 }
 0x280   :  { %v102_v61 = vsel %vm100_vm5, %v101_v59, 0.0 }
 0x281   :  { %v104_v62 = vsel %vm99_vm6, %v103_v60, %v102_v61 }
 0x282   :  { %105 = vst [vmem:[#allocation2] sm:$0xff] %v104_v62 }
 0x283   :  { %145 = shalt.err (!%p142_p4)
}
 0x284   :  { %115 = dma.vmem_to_hbm [thread:$0]  %s113_s15, 128, %s192_s2, [#allocation3]  }
 0x285   :  { %154 = dma.done.wait [#allocation3], 128  }
 0x286   :  { %155 = vsyncadd [#allocation3], 4294967168 }
 0x287   :  { %119 = vsyncpa [#allocation3], 1 }

</bundles_post_ra>
